<compile_context>
chip_gen: v7x
topology: tpu7x:2x2x1
jax: 0.10.0
libtpu: 0.0.40
codegen_flags: <defaults>
</compile_context>

<pallas_src>
import functools

import jax
import jax.numpy as jnp
import numpy as np
from jax.experimental import pallas as pl
from jax.experimental.pallas import tpu as pltpu

_EPS = 1e-10
_NEG_BIG = -1e30  # finite stand-in for -inf: exp(x + _NEG_BIG) underflows to 0.0


def _listnet_pro_kernel(y_full_ref, p_full_ref, y_t_ref, p_t_ref, out_ref, *, L, TT):
    """One (batch-tile, t-tile) grid step.

    Layout: batch on the lane (last) axis, list positions on sublanes.
      y_full_ref, p_full_ref : (L_pad, TB)  labels / preds sorted descending along
                                            axis 0 (rows >= L are zero padding)
      y_t_ref,    p_t_ref    : (TT, TB)     rows [ti*TT, ti*TT + TT) of the same
      out_ref                : (1, 1, TB)   per-batch-element partial sum over this
                                            tile's t rows
    """
    ti = pl.program_id(1)

    y_full = y_full_ref[...]          # (L_pad, TB)
    p_full = p_full_ref[...]          # (L_pad, TB)
    y_t = y_t_ref[...]                # (TT, TB)
    p_t = p_t_ref[...]                # (TT, TB)
    L_pad = y_full.shape[0]

    # max_{j>t}(y[t] - y[j]) == y[t] - y[L-1] because y is sorted descending
    # (FP subtraction is monotone, so this is bit-exact).  Always finite, so no
    # -inf ever reaches exp() even for the discarded t = L-1 row.
    y_last = y_full[L - 1:L, :]       # (1, TB)
    pos_temp = y_t - y_last           # (TT, TB)
    pos_term = p_t * pos_temp         # (TT, TB)

    # Batch-invariant mask folded into the exponent as an additive bias:
    # valid entries (j > t_global and j < L) get 0, everything else _NEG_BIG.
    t_loc = jax.lax.broadcasted_iota(jnp.int32, (TT, L_pad), 0)
    j_idx = jax.lax.broadcasted_iota(jnp.int32, (TT, L_pad), 1)
    t_glob = t_loc + ti * TT
    bias = jnp.where((j_idx > t_glob) & (j_idx < L), 0.0, _NEG_BIG)   # (TT, L_pad)

    # sum_{j>t} exp(p[j] * (y[t] - y[j]))
    neg_temp = y_t[:, None, :] - y_full[None, :, :]          # (TT, L_pad, TB)
    arg = p_full[None, :, :] * neg_temp + bias[:, :, None]   # (TT, L_pad, TB)
    sum_neg = jnp.sum(jnp.exp(arg), axis=1)                  # (TT, TB)

    loss = jnp.log(_EPS + jnp.exp(pos_term) + sum_neg) - pos_term    # (TT, TB)

    # Only list positions t in [0, L-2] contribute (padded t rows drop out too).
    t_valid = (jax.lax.broadcasted_iota(jnp.int32, (TT, 1), 0) + ti * TT) < (L - 1)
    partial = jnp.sum(jnp.where(t_valid, loss, 0.0), axis=0, keepdims=True)  # (1, TB)
    out_ref[...] = partial[None]      # (1, 1, TB)


def listnet_loss(pred_scores, labels, *, vmem_budget_bytes=16 * 1024 * 1024):
    pred_scores = jnp.asarray(pred_scores, jnp.float32)
    labels = jnp.asarray(labels, jnp.float32)
    B, L = labels.shape
    if L < 2:
        return jnp.float32(0.0)

    # Glue (data-dependent): sort labels descending per row, gather preds by the
    # same permutation.  Stays in plain XLA.
    order = jnp.argsort(-labels, axis=-1)
    y = jnp.take_along_axis(labels, order, axis=-1)
    p = jnp.take_along_axis(pred_scores, order, axis=-1)

    LANE, SUB = 128, 8
    bytes_per_lane = 3 * L * L * 4          # ~3 live (t, j) f32 temps per lane
    if bytes_per_lane * LANE <= vmem_budget_bytes:
        # Whole list fits: no t tiling, grow the batch tile instead.
        TT, L_pad = L, L
        TB = max(LANE, (vmem_budget_bytes // bytes_per_lane) // LANE * LANE)
    else:
        # Long lists: tile t, keep the j (reduction) axis full-length on sublanes.
        # TODO(synk): for very long lists (L >~ 4K) also tile the j axis.
        TB = LANE
        TT = max(SUB, (vmem_budget_bytes // (3 * L * 4 * TB)) // SUB * SUB)
        L_pad = -(-L // TT) * TT
    TB = min(TB, -(-B // LANE) * LANE)      # don't pad batch past the next 128
    B_pad = -(-B // TB) * TB
    n_b, n_t = B_pad // TB, L_pad // TT

    # Lane-dense layout: batch on the last (lane) axis, zero padding elsewhere.
    yT = jnp.pad(y, ((0, B_pad - B), (0, L_pad - L))).T     # (L_pad, B_pad)
    pT = jnp.pad(p, ((0, B_pad - B), (0, L_pad - L))).T     # (L_pad, B_pad)

    kernel = functools.partial(_listnet_pro_kernel, L=L, TT=TT)
    out = pl.pallas_call(
        kernel,
        out_shape=jax.ShapeDtypeStruct((n_t, 1, B_pad), jnp.float32),
        grid_spec=pltpu.PrefetchScalarGridSpec(
            num_scalar_prefetch=0,
            grid=(n_b, n_t),                 # ti innermost: full blocks stay resident
            in_specs=[
                pl.BlockSpec((L_pad, TB), lambda bi, ti: (0, bi)),   # y, all j rows
                pl.BlockSpec((L_pad, TB), lambda bi, ti: (0, bi)),   # p, all j rows
                pl.BlockSpec((TT, TB), lambda bi, ti: (ti, bi)),     # y, this t chunk
                pl.BlockSpec((TT, TB), lambda bi, ti: (ti, bi)),     # p, this t chunk
            ],
            out_specs=pl.BlockSpec((1, 1, TB), lambda bi, ti: (ti, 0, bi)),
        ),
        compiler_params=pltpu.CompilerParams(
            dimension_semantics=("parallel", "parallel"),
            vmem_limit_bytes=48 * 1024 * 1024,
        ),
    )(yT, pT, yT, pT)

    # Tiny final reduction in plain JAX: sum partial sums over t tiles, drop the
    # batch padding, mean over the batch.
    per_elem = jnp.sum(out[:, 0, :], axis=0)[:B]
    return jnp.sum(per_elem) / B


def _listnet_reference(pred_scores, labels):
    """NumPy transcription of the PyTorch forward, for verification."""
    pred_scores = np.asarray(pred_scores, dtype=np.float64)
    labels = np.asarray(labels, dtype=np.float64)
    B, L = labels.shape
    order = np.argsort(-labels, axis=-1, kind="stable")
    y = np.take_along_axis(labels, order, axis=-1)
    p = np.take_along_axis(pred_scores, order, axis=-1)
    eps = 1e-10
    total = 0.0
    for t in range(L - 1):
        neg_reward = y[:, t + 1:]
        pos_reward = y[:, t]
        neg_temp = pos_reward[:, None] - neg_reward
        pos_temp = np.max(neg_temp, axis=1)
        loss = (
            np.log(eps + np.exp(p[:, t] * pos_temp)
                   + np.sum(np.exp(p[:, t + 1:] * neg_temp), axis=1))
            - p[:, t] * pos_temp
        )
        total += np.mean(loss)
    return total


if __name__ == "__main__":
    B, L = 4, 8
    key = jax.random.PRNGKey(0)
    k1, k2 = jax.random.split(key)
    pred_scores = jax.random.normal(k1, (B, L), dtype=jnp.float32)
    labels = jax.random.normal(k2, (B, L), dtype=jnp.float32)

    out = listnet_loss(pred_scores, labels)
    jax.block_until_ready(out)

    ref = _listnet_reference(np.array(pred_scores), np.array(labels))
    assert np.allclose(float(out), ref, rtol=1e-3, atol=1e-4), (float(out), ref)

    print("KERNEL_OK")
</pallas_src>

<mosaic_0001>
module attributes {stable_mosaic.version = 11 : i64} {
  func.func @_listnet_pro_kernel(%arg0: i32, %arg1: i32, %arg2: memref<8x128xf32, #tpu.memory_space<vmem>>, %arg3: memref<8x128xf32, #tpu.memory_space<vmem>>, %arg4: memref<8x128xf32, #tpu.memory_space<vmem>>, %arg5: memref<8x128xf32, #tpu.memory_space<vmem>>, %arg6: memref<1x1x128xf32, #tpu.memory_space<vmem>>) attributes {dimension_semantics = [#tpu.dimension_semantics<parallel>, #tpu.dimension_semantics<parallel>], iteration_bounds = array<i64: 1, 1>, scalar_prefetch = 0 : i64, scratch_operands = 0 : i64, tpu.core_type = #tpu.core_type<tc>, window_params = [{transform_indices = @transform_0, window_bounds = array<i64: 8, 128>}, {transform_indices = @transform_1, window_bounds = array<i64: 8, 128>}, {transform_indices = @transform_2, window_bounds = array<i64: 8, 128>}, {transform_indices = @transform_3, window_bounds = array<i64: 8, 128>}, {transform_indices = @transform_4, window_bounds = array<i64: 1, 1, 128>}]} {
    %c0 = arith.constant 0 : index
    %c0_0 = arith.constant 0 : index
    %0 = vector.load %arg2[%c0, %c0_0] : memref<8x128xf32, #tpu.memory_space<vmem>>, vector<8x128xf32>
    %c0_1 = arith.constant 0 : index
    %c0_2 = arith.constant 0 : index
    %1 = vector.load %arg3[%c0_1, %c0_2] : memref<8x128xf32, #tpu.memory_space<vmem>>, vector<8x128xf32>
    %c0_3 = arith.constant 0 : index
    %c0_4 = arith.constant 0 : index
    %2 = vector.load %arg4[%c0_3, %c0_4] : memref<8x128xf32, #tpu.memory_space<vmem>>, vector<8x128xf32>
    %c0_5 = arith.constant 0 : index
    %c0_6 = arith.constant 0 : index
    %3 = vector.load %arg5[%c0_5, %c0_6] : memref<8x128xf32, #tpu.memory_space<vmem>>, vector<8x128xf32>
    %4 = vector.extract_strided_slice %0 {offsets = [7, 0], sizes = [1, 128], strides = [1, 1]} : vector<8x128xf32> to vector<1x128xf32>
    %5 = vector.broadcast %4 : vector<1x128xf32> to vector<8x128xf32>
    %6 = arith.subf %2, %5 : vector<8x128xf32>
    %7 = arith.mulf %3, %6 : vector<8x128xf32>
    %8 = tpu.iota {dimensions = array<i32: 0>} : vector<8x8xi32>
    %9 = tpu.iota {dimensions = array<i32: 1>} : vector<8x8xi32>
    %c8_i32 = arith.constant 8 : i32
    %10 = arith.muli %arg1, %c8_i32 : i32
    %11 = vector.broadcast %10 : i32 to vector<8x8xi32>
    %12 = arith.addi %8, %11 : vector<8x8xi32>
    %13 = arith.cmpi sgt, %9, %12 : vector<8x8xi32>
    %c8_i32_7 = arith.constant 8 : i32
    %14 = vector.broadcast %c8_i32_7 : i32 to vector<8x8xi32>
    %15 = arith.cmpi slt, %9, %14 : vector<8x8xi32>
    %16 = arith.andi %13, %15 : vector<8x8xi1>
    %cst = arith.constant 0.000000e+00 : f32
    %cst_8 = arith.constant -1.000000e+30 : f32
    %17 = vector.broadcast %cst : f32 to vector<8x8xf32>
    %18 = vector.broadcast %cst_8 : f32 to vector<8x8xf32>
    %19 = arith.select %16, %17, %18 : vector<8x8xi1>, vector<8x8xf32>
    %20 = vector.shape_cast %2 : vector<8x128xf32> to vector<8x1x128xf32>
    %21 = vector.shape_cast %0 : vector<8x128xf32> to vector<1x8x128xf32>
    %22 = vector.broadcast %20 : vector<8x1x128xf32> to vector<8x8x128xf32>
    %23 = vector.broadcast %21 : vector<1x8x128xf32> to vector<8x8x128xf32>
    %24 = arith.subf %22, %23 : vector<8x8x128xf32>
    %25 = vector.shape_cast %1 : vector<8x128xf32> to vector<1x8x128xf32>
    %26 = vector.broadcast %25 : vector<1x8x128xf32> to vector<8x8x128xf32>
    %27 = arith.mulf %26, %24 : vector<8x8x128xf32>
    %28 = vector.shape_cast %19 : vector<8x8xf32> to vector<8x8x1xf32>
    %29 = vector.broadcast %28 : vector<8x8x1xf32> to vector<8x8x128xf32>
    %30 = arith.addf %27, %29 : vector<8x8x128xf32>
    %31 = math.exp %30 : vector<8x8x128xf32>
    %cst_9 = arith.constant dense<0.000000e+00> : vector<8x128xf32>
    %32 = vector.multi_reduction <add>, %31, %cst_9 [1] : vector<8x8x128xf32> to vector<8x128xf32>
    %33 = math.exp %7 : vector<8x128xf32>
    %cst_10 = arith.constant 1.000000e-10 : f32
    %34 = vector.broadcast %cst_10 : f32 to vector<8x128xf32>
    %35 = arith.addf %34, %33 : vector<8x128xf32>
    %36 = arith.addf %35, %32 : vector<8x128xf32>
    %37 = math.log %36 : vector<8x128xf32>
    %38 = arith.subf %37, %7 : vector<8x128xf32>
    %39 = tpu.iota {dimensions = array<i32: 0>} : vector<8x1xi32>
    %c8_i32_11 = arith.constant 8 : i32
    %40 = arith.muli %arg1, %c8_i32_11 : i32
    %41 = vector.broadcast %40 : i32 to vector<8x1xi32>
    %42 = arith.addi %39, %41 : vector<8x1xi32>
    %c7_i32 = arith.constant 7 : i32
    %43 = vector.broadcast %c7_i32 : i32 to vector<8x1xi32>
    %44 = arith.cmpi slt, %42, %43 : vector<8x1xi32>
    %cst_12 = arith.constant 0.000000e+00 : f32
    %45 = vector.shape_cast %44 : vector<8x1xi1> to vector<8x1xi1>
    %46 = vector.broadcast %45 : vector<8x1xi1> to vector<8x128xi1>
    %47 = vector.broadcast %cst_12 : f32 to vector<8x128xf32>
    %48 = arith.select %46, %38, %47 : vector<8x128xi1>, vector<8x128xf32>
    %cst_13 = arith.constant dense<0.000000e+00> : vector<128xf32>
    %49 = vector.multi_reduction <add>, %48, %cst_13 [0] : vector<8x128xf32> to vector<128xf32>
    %50 = vector.shape_cast %49 : vector<128xf32> to vector<1x128xf32>
    %51 = vector.shape_cast %50 : vector<1x128xf32> to vector<1x1x128xf32>
    %c0_14 = arith.constant 0 : index
    %c0_15 = arith.constant 0 : index
    %c0_16 = arith.constant 0 : index
    %52 = vector.load %arg6[%c0_14, %c0_15, %c0_16] : memref<1x1x128xf32, #tpu.memory_space<vmem>>, vector<1x1x128xf32>
    tpu.vector_store %arg6[%c0_14, %c0_15, %c0_16], %51 {strides = array<i32>} : memref<1x1x128xf32, #tpu.memory_space<vmem>>, vector<1x1x128xf32>,
    return
  }
  func.func @transform_0(%arg0: i32, %arg1: i32) -> (i32, i32) {
    %c0_i32 = arith.constant 0 : i32
    %c0_i32_0 = arith.constant 0 : i32
    return %c0_i32, %arg0 : i32, i32
  }
  func.func @transform_1(%arg0: i32, %arg1: i32) -> (i32, i32) {
    %c0_i32 = arith.constant 0 : i32
    %c0_i32_0 = arith.constant 0 : i32
    return %c0_i32, %arg0 : i32, i32
  }
  func.func @transform_2(%arg0: i32, %arg1: i32) -> (i32, i32) {
    %c0_i32 = arith.constant 0 : i32
    return %arg1, %arg0 : i32, i32
  }
  func.func @transform_3(%arg0: i32, %arg1: i32) -> (i32, i32) {
    %c0_i32 = arith.constant 0 : i32
    return %arg1, %arg0 : i32, i32
  }
  func.func @transform_4(%arg0: i32, %arg1: i32) -> (i32, i32, i32) {
    %c0_i32 = arith.constant 0 : i32
    %c0_i32_0 = arith.constant 0 : i32
    return %arg1, %c0_i32, %arg0 : i32, i32, i32
  }
}

</mosaic_0001>

<bundles_post_ra>
// kernel: tpu_custom_call.1
= control target key start
LH: loop header
LB: loop body
LE: loop exit
PB: predicated region body
PF: predicated region fallthrough
CT: control target
= control target key end

     0   :  { %9 = vsyncpa [#allocation3], 0  ;;  %s591_s0 = inlined_call_operand.hbm [shape: f32[8,128], index: 0, kind: input, shape index: {}]   ;;  %s592_s1 = inlined_call_operand.hbm [shape: f32[8,128], index: 1, kind: input, shape index: {}]   ;;  %s593_s2 = inlined_call_operand.hbm [shape: f32[8,128], index: 2, kind: input, shape index: {}]   ;;  %s594_s3 = inlined_call_operand.vmem [shape: f32[8,128], index: 3, kind: input, shape index: {}]   ;;  %s595_s4 = inlined_call_operand.hbm [shape: f32[1,1,128], index: 4, kind: output, shape index: {}]  }
   0x1   :  { %10 = vsyncpa [#allocation6], 0 }
   0x2   :  { %11 = vsyncpa [#allocation4], 0  ;;  %s486_s15 = smov [#allocation5]   ;;  %s487_s17 = smov [#allocation2]  }
   0x3   :  { %s28_s16 = sshll.u32 %s486_s15, 4  ;;  %s18_s18 = sshll.u32 %s487_s17, 4  ;;  %s29_s16 = int_to_ptr.vmem [resolvable:$true] %s28_s16  ;;  %s19_s18 = int_to_ptr.vmem [resolvable:$true] %s18_s18 }
   0x4   :  { %s392_s21 = scalar_lea.hbm %s592_s1, 128 }
   0x5   :  { %p393_p0 = scmp.ne.s32.totalorder %s592_s1, %s392_s21  ;;  %p396_p1 = scmp.lt.u32.totalorder %s392_s21, %s592_s1 }
   0x7   :  { %p398_p2 = pnand %p396_p1, %p393_p0 }
   0x9   :  { %401 = shalt.err (!%p398_p2)
}
   0xa   :  { %s402_s26 = scalar_lea.vmem %s29_s16, 128  ;;  %p407_p4 = scmp.lt.s32.totalorder %s29_s16, %s29_s16 }
   0xb   :  { %p403_p3 = scmp.ne.s32.totalorder %s29_s16, %s402_s26  ;;  %p408_p5 = scmp.lt.s32.totalorder %s402_s26, %s402_s26 }
   0xd   :  { %p409_p6 = por %p408_p5, %p407_p4 }
   0xf   :  { %p410_p7 = pnand %p409_p6, %p403_p3 }
  0x11   :  { %413 = shalt.err (!%p410_p7)
}
  0x12   :  { %31 = dma.hbm_to_vmem [thread:$0]  %s592_s1, 128, %s29_s16, [#allocation6]  }
  0x13   :  { %s414_s5 = scalar_lea.hbm %s591_s0, 128 }
  0x14   :  { %p415_p8 = scmp.ne.s32.totalorder %s591_s0, %s414_s5  ;;  %p418_p9 = scmp.lt.u32.totalorder %s414_s5, %s591_s0 }
  0x16   :  { %p420_p10 = pnand %p418_p9, %p415_p8 }
  0x18   :  { %423 = shalt.err (!%p420_p10)
}
  0x19   :  { %s424_s10 = scalar_lea.vmem %s19_s18, 128  ;;  %p429_p12 = scmp.lt.s32.totalorder %s19_s18, %s19_s18 }
  0x1a   :  { %p425_p11 = scmp.ne.s32.totalorder %s19_s18, %s424_s10  ;;  %p430_p13 = scmp.lt.s32.totalorder %s424_s10, %s424_s10 }
  0x1c   :  { %p431_p0 = por %p430_p13, %p429_p12 }
  0x1e   :  { %p432_p1 = pnand %p431_p0, %p425_p11 }
  0x20   :  { %435 = shalt.err (!%p432_p1)
}
  0x21   :  { %21 = dma.hbm_to_vmem [thread:$0]  %s591_s0, 128, %s19_s18, [#allocation3]  }
  0x22   :  { %s488_s12 = smov [#allocation7]   ;;  %s436_s16 = scalar_lea.hbm %s593_s2, 128 }
  0x23   :  { %s38_s13 = sshll.u32 %s488_s12, 4  ;;  %p437_p2 = scmp.ne.s32.totalorder %s593_s2, %s436_s16  ;;  %s39_s13 = int_to_ptr.vmem [resolvable:$true] %s38_s13 }
  0x24   :  { %p440_p3 = scmp.lt.u32.totalorder %s436_s16, %s593_s2 }
  0x26   :  { %p442_p4 = pnand %p440_p3, %p437_p2 }
  0x28   :  { %445 = shalt.err (!%p442_p4)
}
  0x29   :  { %s446_s22 = scalar_lea.vmem %s39_s13, 128  ;;  %p451_p6 = scmp.lt.s32.totalorder %s39_s13, %s39_s13 }
  0x2a   :  { %p447_p5 = scmp.ne.s32.totalorder %s39_s13, %s446_s22  ;;  %p452_p7 = scmp.lt.s32.totalorder %s446_s22, %s446_s22 }
  0x2c   :  { %p453_p8 = por %p452_p7, %p451_p6 }
  0x2e   :  { %p454_p9 = pnand %p453_p8, %p447_p5 }
  0x30   :  { %457 = shalt.err (!%p454_p9)
}
  0x31   :  { %41 = dma.hbm_to_vmem [thread:$0]  %s593_s2, 128, %s39_s13, [#allocation6]  }
  0x32   :  { %480 = dma.done.wait [#allocation3], 128  }
  0x33   :  { %481 = vsyncadd [#allocation3], 4294967168  ;;  %v57_v0 = vlaneseq }
  0x34   :  { %482 = dma.done.wait [#allocation6], 256  }
  0x35   :  { %483 = vsyncadd [#allocation6], 4294967040  ;;  %v489_v1 = vmov 1966171168   ;;  %v553_v3 = vshrl.u32 %v57_v0, 7  ;;  %v66_v4 = vand.u32 127, %v57_v0 }
  0x36   :  { %v77_v2 = vunpack.c.l.s4 %v489_v1  ;;  %v490_v10 = vmov -1e+30   ;;  %v561_v15 = vld [vmem:[#allocation7] sm:$0xff]  ;;  %v53_v47 = vld [vmem:[#allocation2] sm:$0xff]  ;;  %v54_v50 = vld [vmem:[#allocation5] sm:$0xff]  ;;  %vm319_vm3 = vcmask 1041409  }
  0x37   :  { %vm70_vm0 = vcmp.gt.s32.totalorder %v66_v4, %v553_v3  ;;  %vm71_vm1 = vcmp.lt.s32.totalorder %v66_v4, 8  ;;  %v196_v6 = vsub.s32 2, %v553_v3  ;;  %v126_v7 = vsub.s32 0, %v553_v3 }
  0x38   :  { %v78_v5 = vunpack.c.0.s8 %v77_v2  ;;  %vm72_vm2 = vmand %vm70_vm0, %vm71_vm1  ;;  %v203_v8 = vsub.s32 3, %v553_v3  ;;  %v189_v9 = vsub.s32 1, %v553_v3  ;;  %v217_v17 = vsub.s32 5, %v553_v3 }
  0x39   :  { %v73_v11 = vsel %vm72_vm2, 0.0, %v490_v10  ;;  %v210_v18 = vsub.s32 4, %v553_v3  ;;  %v75_v21 = vcombine.high %v561_v15, %v561_v15  ;;  %v224_v27 = vsub.s32 6, %v553_v3 }
  0x3a   :  { %v81_v12 = vsub.s32 %v78_v5, %v553_v3  ;;  %v197_v13 = vrot.slane %v73_v11, %v196_v6  ;;  %v183_v14 = vrot.slane %v73_v11, %v126_v7  ;;  %v204_v16 = vrot.slane %v73_v11, %v203_v8 }
  0x3b   :  { %v190_v19 = vrot.slane %v73_v11, %v189_v9  ;;  %v218_v25 = vrot.slane %v73_v11, %v217_v17  ;;  %v211_v26 = vrot.slane %v73_v11, %v210_v18  ;;  %v59_v28 = vsub.s32 7, %v553_v3 }
  0x3c   :  { %199 = vbcast.lane.b32.xlu1 %v197_v13, 256  ;;  %185 = vbcast.lane.b32.xlu0 %v183_v14, 256  ;;  %v82_v20 = vrot.slane %v561_v15, %v81_v12  ;;  %v89_v24 = vrot.slane %v75_v21, %v81_v12  ;;  %v225_v40 = vrot.slane %v73_v11, %v224_v27  ;;  %v56_v27 = vld [vmem:[%s594_s3] sm:$0xff]  ;;  %vm321_vm4 = vcmask 1042434   ;;  %s491_s3 = smov [#allocation8]  }
  0x3d   :  { %v232_v41 = vrot.slane %v73_v11, %v59_v28  ;;  %vm323_vm5 = vcmask 1043459   ;;  %vm325_vm6 = vcmask 1044484   ;;  %vm327_vm7 = vcmask 1045509   ;;  %s355_s24 = sshll.u32 %s491_s3, 4  ;;  %s356_s24 = int_to_ptr.vmem [resolvable:$true] %s355_s24 }
  0x3e   :  { %v98_v22 = vrot.slane %v82_v20, %v81_v12  ;;  %v90_v23 = vcombine.high %v82_v20, %v82_v20  ;;  %v91_v32 = vcombine.high %v89_v24, %v89_v24  ;;  %v105_v33 = vrot.slane %v89_v24, %v81_v12  ;;  %s458_s25 = scalar_lea.vmem %s356_s24, 16  ;;  %s462_s26 = scalar_lea.vmem %s356_s24, 32 }
  0x3f   :  { %vm329_vm8 = vcmask 1046534   ;;  %vm331_vm9 = vcmask 1047559   ;;  %vm338_vm10 = vcmp.lt.s32.totalorder %v553_v3, 7  ;;  %p459_p10 = scmp.ne.s32.totalorder %s356_s24, %s458_s25  ;;  %p463_p11 = scmp.lt.s32.totalorder %s356_s24, %s356_s24 }
  0x40   :  { %206 = vbcast.lane.b32.xlu1 %v204_v16, 256  ;;  %192 = vbcast.lane.b32.xlu0 %v190_v19, 256  ;;  %v120_v29 = vcombine.high %v98_v22, %v98_v22  ;;  %v127_v30 = vrot.slane %v98_v22, %v126_v7  ;;  %v112_v31 = vrot.slane %v90_v23, %v81_v12  ;;  %p464_p12 = scmp.lt.s32.totalorder %s462_s26, %s458_s25 }
  0x41   :  { %v119_v37 = vrot.slane %v91_v32, %v81_v12  ;;  %v143_v38 = vrot.slane %v105_v33, %v126_v7  ;;  %v121_v39 = vcombine.high %v105_v33, %v105_v33  ;;  %v60_v16 = vrot.slane %v53_v47, %v59_v28 }
  0x42   :  { %v135_v34 = vrot.slane %v120_v29, %v126_v7  ;;  %v122_v35 = vcombine.high %v112_v31, %v112_v31  ;;  %v131_v36 = vrot.slane %v112_v31, %v126_v7  ;;  %v164_v49 = vsub.f32 %v127_v30, %v53_v47  ;;  %p465_p13 = por %p464_p12, %p463_p11 }
  0x43   :  { %v147_v43 = vrot.slane %v119_v37, %v126_v7  ;;  %v151_v44 = vrot.slane %v121_v39, %v126_v7  ;;  %v123_v45 = vcombine.high %v119_v37, %v119_v37  ;;  %v168_v58 = vsub.f32 %v143_v38, %v53_v47 }
  0x44   :  { %220 = vbcast.lane.b32.xlu1 %v218_v25, 256  ;;  %213 = vbcast.lane.b32.xlu0 %v211_v26, 256  ;;  %v139_v42 = vrot.slane %v122_v35, %v126_v7  ;;  %v166_v48 = vsub.f32 %v135_v34, %v53_v47  ;;  %v172_v52 = vmul.f32 %v164_v49, %v54_v50  ;;  %p466_p0 = pnand %p465_p13, %p459_p10 }
  0x45   :  { %v155_v46 = vrot.slane %v123_v45, %v126_v7  ;;  %v165_v54 = vsub.f32 %v131_v36, %v53_v47  ;;  %v169_v57 = vsub.f32 %v147_v43, %v53_v47  ;;  %v176_v5 = vmul.f32 %v168_v58, %v54_v50 }
  0x46   :  { %v174_v51 = vmul.f32 %v166_v48, %v54_v50  ;;  %v167_v53 = vsub.f32 %v139_v42, %v53_v47  ;;  %v170_v6 = vsub.f32 %v151_v44, %v53_v47  ;;  %v61_v26 = vsub.f32 %v561_v15, %v60_v16 }
  0x47   :  { %v173_v62 = vmul.f32 %v165_v54, %v54_v50  ;;  %v177_v4 = vmul.f32 %v169_v57, %v54_v50  ;;  %v171_v9 = vsub.f32 %v155_v46, %v53_v47 }
  0x48   :  { %227 = vbcast.lane.b32.xlu0 %v225_v40, 256  ;;  %234 = vbcast.lane.b32.xlu1 %v232_v41, 256  ;;  %v175_v61 = vmul.f32 %v167_v53, %v54_v50  ;;  %v178_v14 = vmul.f32 %v170_v6, %v54_v50  ;;  %v574_v34 = vmul.f32 %v61_v26, %v56_v27 }
  0x49   :  { %v179_v19 = vmul.f32 %v171_v9, %v54_v50 }
  0x4a   :  { %v308_v42 = vmul.f32 1.442695, %v574_v34 }
  0xae   :  { %v200_v55 = vpop.permute.xlu1 %199  ;;  %v186_v56 = vpop.permute.xlu0 %185 }
  0xaf   :  { %v238_v59 = vadd.f32 %v200_v55, %v174_v51  ;;  %v236_v60 = vadd.f32 %v186_v56, %v172_v52 }
  0xb1   :  { %v248_v63 = vmul.f32 1.442695, %v238_v59  ;;  %v244_v0 = vmul.f32 1.442695, %v236_v60 }
  0xb2   :  { %v207_v1 = vpop.permute.xlu1 %206  ;;  %v193_v2 = vpop.permute.xlu0 %192 }
  0xb3   :  { %372 = vpow2.f32 %v248_v63  ;;  %v239_v7 = vadd.f32 %v207_v1, %v175_v61  ;;  %v237_v8 = vadd.f32 %v193_v2, %v173_v62 }
  0xb4   :  { %374 = vpow2.f32 %v244_v0 }
  0xb5   :  { %v250_v10 = vmul.f32 1.442695, %v239_v7  ;;  %v246_v11 = vmul.f32 1.442695, %v237_v8 }
  0xb6   :  { %v221_v12 = vpop.permute.xlu1 %220  ;;  %v214_v13 = vpop.permute.xlu0 %213 }
  0xb7   :  { %376 = vpow2.f32 %v250_v10  ;;  %v241_v17 = vadd.f32 %v221_v12, %v177_v4  ;;  %v240_v18 = vadd.f32 %v214_v13, %v176_v5 }
  0xb8   :  { %378 = vpow2.f32 %v246_v11 }
  0xb9   :  { %v254_v20 = vmul.f32 1.442695, %v241_v17  ;;  %v252_v21 = vmul.f32 1.442695, %v240_v18 }
  0xba   :  { %v228_v22 = vpop.permute.xlu0 %227  ;;  %v235_v23 = vpop.permute.xlu1 %234 }
  0xbb   :  { %380 = vpow2.f32 %v254_v20  ;;  %v242_v24 = vadd.f32 %v228_v22, %v178_v14  ;;  %v243_v25 = vadd.f32 %v235_v23, %v179_v19 }
  0xbc   :  { %382 = vpow2.f32 %v252_v21 }
  0xbd   :  { %v373_v28 = vpop.eup %372  ;;  %v256_v29 = vmul.f32 1.442695, %v242_v24  ;;  %v258_v30 = vmul.f32 1.442695, %v243_v25 }
  0xbe   :  { %v375_v31 = vpop.eup %374  ;;  %v272_v32 = vrot.slane %v373_v28, 4 }
  0xbf   :  { %v260_v33 = vrot.slane %v375_v31, 4  ;;  %384 = vpow2.f32 %v256_v29 }
  0xc0   :  { %v273_v35 = vadd.f32 %v373_v28, %v272_v32  ;;  %386 = vpow2.f32 %v258_v30 }
  0xc1   :  { %v377_v36 = vpop.eup %376  ;;  %v261_v37 = vadd.f32 %v375_v31, %v260_v33  ;;  %388 = vpow2.f32 %v308_v42 }
  0xc2   :  { %v379_v38 = vpop.eup %378  ;;  %v274_v15 = vrot.slane %v273_v35, 2  ;;  %v278_v39 = vrot.slane %v377_v36, 4 }
  0xc3   :  { %v262_v40 = vrot.slane %v261_v37, 2  ;;  %v266_v41 = vrot.slane %v379_v38, 4 }
  0xc4   :  { %v279_v43 = vadd.f32 %v377_v36, %v278_v39  ;;  %v275_v48 = vadd.f32 %v274_v15, %v273_v35 }
  0xc5   :  { %v381_v44 = vpop.eup %380  ;;  %v263_v45 = vadd.f32 %v262_v40, %v261_v37  ;;  %v267_v46 = vadd.f32 %v379_v38, %v266_v41 }
  0xc6   :  { %v383_v47 = vpop.eup %382  ;;  %v280_v49 = vrot.slane %v279_v43, 2  ;;  %v290_v50 = vrot.slane %v381_v44, 4  ;;  %v276_v60 = vrot.slane %v275_v48, 1 }
  0xc7   :  { %v268_v51 = vrot.slane %v267_v46, 2  ;;  %v284_v52 = vrot.slane %v383_v47, 4  ;;  %v264_v56 = vrot.slane %v263_v45, 1 }
  0xc8   :  { %v281_v53 = vadd.f32 %v280_v49, %v279_v43  ;;  %v291_v54 = vadd.f32 %v381_v44, %v290_v50  ;;  %v277_v10 = vadd.f32 %v276_v60, %v275_v48 }
  0xc9   :  { %v385_v55 = vpop.eup %384  ;;  %v269_v57 = vadd.f32 %v268_v51, %v267_v46  ;;  %v285_v58 = vadd.f32 %v383_v47, %v284_v52  ;;  %v265_v6 = vadd.f32 %v264_v56, %v263_v45 }
  0xca   :  { %v387_v59 = vpop.eup %386  ;;  %v292_v61 = vrot.slane %v291_v54, 2  ;;  %v296_v62 = vrot.slane %v385_v55, 4  ;;  %v282_v63 = vrot.slane %v281_v53, 1 }
  0xcb   :  { %v270_v0 = vrot.slane %v269_v57, 1  ;;  %v286_v1 = vrot.slane %v285_v58, 2  ;;  %v302_v2 = vrot.slane %v387_v59, 4  ;;  %v389_v21 = vpop.eup %388 }
  0xcc   :  { %v293_v4 = vadd.f32 %v292_v61, %v291_v54  ;;  %v297_v5 = vadd.f32 %v385_v55, %v296_v62  ;;  %v283_v13 = vadd.f32 %v282_v63, %v281_v53  ;;  %v310_v29 = vadd.f32 1e-10, %v389_v21 }
  0xcd   :  { %v271_v7 = vadd.f32 %v270_v0, %v269_v57  ;;  %v287_v8 = vadd.f32 %v286_v1, %v285_v58  ;;  %v303_v9 = vadd.f32 %v387_v59, %v302_v2 }
  0xce   :  { %v294_v11 = vrot.slane %v293_v4, 1  ;;  %v298_v12 = vrot.slane %v297_v5, 2 }
  0xcf   :  { %v320_v14 = vsel %vm319_vm3, %v271_v7, %v265_v6  ;;  %v288_v16 = vrot.slane %v287_v8, 1  ;;  %v304_v17 = vrot.slane %v303_v9, 2 }
  0xd0   :  { %v322_v18 = vsel %vm321_vm4, %v277_v10, %v320_v14  ;;  %v295_v19 = vadd.f32 %v294_v11, %v293_v4  ;;  %v299_v20 = vadd.f32 %v298_v12, %v297_v5 }
  0xd1   :  { %v289_v22 = vadd.f32 %v288_v16, %v287_v8  ;;  %v324_v23 = vsel %vm323_vm5, %v283_v13, %v322_v18  ;;  %v305_v24 = vadd.f32 %v304_v17, %v303_v9 }
  0xd2   :  { %v300_v25 = vrot.slane %v299_v20, 1 }
  0xd3   :  { %v326_v26 = vsel %vm325_vm6, %v289_v22, %v324_v23  ;;  %v306_v27 = vrot.slane %v305_v24, 1 }
  0xd4   :  { %v301_v28 = vadd.f32 %v300_v25, %v299_v20  ;;  %v328_v30 = vsel %vm327_vm7, %v295_v19, %v326_v26 }
  0xd5   :  { %v307_v31 = vadd.f32 %v306_v27, %v305_v24 }
  0xd6   :  { %v330_v32 = vsel %vm329_vm8, %v301_v28, %v328_v30 }
  0xd7   :  { %v332_v33 = vsel %vm331_vm9, %v307_v31, %v330_v32 }
  0xd8   :  { %v334_v35 = vadd.f32 %v332_v33, %v310_v29 }
  0xda   :  { %390 = vlog2.f32 %v334_v35 }
  0xe4   :  { %v391_v36 = vpop.eup %390 }
  0xe5   :  { %v336_v37 = vmul.f32 0.6931472, %v391_v36 }
  0xe7   :  { %v337_v38 = vsub.f32 %v336_v37, %v574_v34 }
  0xe9   :  { %v341_v15 = vsel %vm338_vm10, %v337_v38, 0.0 }
  0xea   :  { %v342_v39 = vrot.slane %v341_v15, 4 }
  0xec   :  { %v343_v40 = vadd.f32 %v342_v39, %v341_v15 }
  0xee   :  { %v344_v41 = vrot.slane %v343_v40, 2 }
  0xf0   :  { %v345_v42 = vadd.f32 %v344_v41, %v343_v40 }
  0xf2   :  { %v346_v43 = vrot.slane %v345_v42, 1 }
  0xf4   :  { %v347_v44 = vadd.f32 %v346_v43, %v345_v42 }
  0xf6   :  { %348 = vst [vmem:[#allocation8] sm:$0x1] %v347_v44 }
  0xf7   :  { %469 = shalt.err (!%p466_p0)
}
  0xf8   :  { %s470_s29 = scalar_lea.hbm %s595_s4, 16 }
  0xf9   :  { %p471_p1 = scmp.ne.s32.totalorder %s595_s4, %s470_s29  ;;  %p474_p2 = scmp.lt.u32.totalorder %s470_s29, %s595_s4 }
  0xfb   :  { %p476_p3 = pnand %p474_p2, %p471_p1 }
  0xfd   :  { %479 = shalt.err (!%p476_p3)
}
  0xfe   :  { %358 = dma.vmem_to_hbm [thread:$0]  %s356_s24, 16, %s595_s4, [#allocation4]  }
  0xff   :  { %484 = dma.done.wait [#allocation4], 16  }
 0x100   :  { %485 = vsyncadd [#allocation4], 4294967280 }
 0x101   :  { %362 = vsyncpa [#allocation3], 1 }
 0x102   :  { %363 = vsyncpa [#allocation6], 1 }
 0x103   :  { %364 = vsyncpa [#allocation4], 1 }

</bundles_post_ra>
